<compile_context>
chip_gen: v6e
topology: v6e:2x2x1
jax: 0.10.0
libtpu: 0.0.40
codegen_flags: <defaults>
</compile_context>

<pallas_src>
import functools

import jax
import jax.numpy as jnp
from jax import lax
from jax.experimental import pallas as pl
from jax.experimental.pallas import tpu as pltpu


VMEM_LIMIT_BYTES = 48 * 1024 * 1024   # < 64 MiB physical on v7x; plenty on v5e/v6e


# ----------------------------- Pallas kernels ------------------------------

def _conv_taps_kernel(x_ref, w_ref, b_ref, o_ref, xs_ref, *, offsets, cin, relu):
    """3x3 conv as ONE fat matmul on tap-concatenated slabs (channels-first).

    x_ref  : (Cin, Min)     bf16  flat zero-padded image, one batch element
    w_ref  : (Cout, T*Cin)  bf16  tap-concatenated weights (BN scale folded in)
    b_ref  : (Cout, 1)      f32   bias (+ BN shift folded in)
    o_ref  : (Cout, M)      bf16  output rows in padded-width layout (lane-dense)
    xs_ref : (T*Cin, M)     bf16  VMEM scratch holding the T shifted slabs
    """
    m = o_ref.shape[-1]
    for t, off in enumerate(offsets):                        # static python loop
        xs_ref[pl.ds(t * cin, cin), :] = x_ref[:, pl.ds(off, m)]
    acc = jnp.dot(w_ref[...], xs_ref[...], preferred_element_type=jnp.float32)
    acc = acc + b_ref[...]
    if relu:
        acc = jnp.maximum(acc, 0.0)
    o_ref[...] = acc.astype(o_ref.dtype)


def _attention_kernel(gamma_ref, x_ref, pos_ref, w_ref, b_ref, o_ref, *, cqp):
    """Fused per-batch position attention, channels-first.

    (+pos) -> one fused QKV projection -> softmax(Q^T K) -> V @ attn^T -> residual.
    Rows [0:cqp) of the projection are q, [cqp:2*cqp) are k, the rest is v.
    """
    x = x_ref[...].astype(jnp.float32) + pos_ref[...]        # (C, L) f32
    xb = x.astype(jnp.bfloat16)

    qkv = jnp.dot(w_ref[...], xb, preferred_element_type=jnp.float32) + b_ref[...]
    q = jnp.maximum(qkv[:cqp, :], 0.0)                       # relu on the query only
    k = qkv[cqp:2 * cqp, :]                                  # (cqp, L)
    v = qkv[2 * cqp:, :]                                     # (C, L)

    # energy[i, j] = <q[:, i], k[:, j]>  -- transpose the tiny (cqp, L) q once, then
    # a plain bf16 (L, cqp) x (cqp, L) matmul with f32 accumulation.
    q_t = jnp.transpose(q)                                   # (L, cqp)
    energy = jnp.dot(q_t.astype(jnp.bfloat16), k.astype(jnp.bfloat16),
                     preferred_element_type=jnp.float32)     # (L, L)
    energy = energy - jnp.max(energy, axis=-1, keepdims=True)
    p = jnp.exp(energy)
    inv = pl.reciprocal(jnp.sum(p, axis=-1, keepdims=True), approx=True)   # EUP
    attn = (p * inv).astype(jnp.bfloat16)                    # softmax rows (L, L)

    # out[c, i] = sum_j attn[i, j] * v[c, j]
    out = lax.dot_general(v.astype(jnp.bfloat16), attn,
                          (((1,), (1,)), ((), ())),
                          preferred_element_type=jnp.float32)              # (C, L)
    o_ref[...] = (gamma_ref[0, 0] * out + x).astype(o_ref.dtype)


# ------------------------------ JAX wrappers --------------------------------

def _fold_conv_weights(w, b, scale, shift, stride):
    """Fold eval-mode BN into the conv; lay taps out as one (Cout, T*Cin_eff) matrix."""
    cout, cin = w.shape[0], w.shape[1]
    w_f = (w * scale[:, None, None, None]).astype(jnp.float32)        # OIHW, scaled
    b_f = (b * scale + shift).reshape(cout, 1).astype(jnp.float32)
    if stride == 1:
        # tap t = ky*3 + kx, flat K index = t*Cin + ci
        w_cat = jnp.transpose(w_f, (0, 2, 3, 1)).reshape(cout, 9 * cin)
    else:  # stride 2 via space-to-depth: 4 taps over 4*Cin s2d channels
        w2 = jnp.zeros((cout, 2, 2, 2, 2, cin), jnp.float32)           # [co,a,b,p,q,ci]
        for ky in range(3):
            for kx in range(3):
                a, p = divmod(ky, 2)
                bb, q = divmod(kx, 2)
                w2 = w2.at[:, a, bb, p, q, :].set(w_f[:, :, ky, kx])
        w_cat = w2.reshape(cout, 16 * cin)
    return w_cat.astype(jnp.bfloat16), b_f


def conv3x3_bn(x_nchw, w, b, bn_scale, bn_shift, *, stride, relu):
    """3x3 conv (pad=1) + bias + folded BatchNorm (+ optional ReLU), channels-first.

    Lowered to one (Cout, T*Cin) x (T*Cin, M) matmul per batch element with the flat
    spatial axis M on lanes (lane-dense output).  No HBM im2col.
    """
    B, Cin, H, W = x_nchw.shape
    Cout = w.shape[0]
    w_cat, b_f = _fold_conv_weights(w, b, bn_scale, bn_shift, stride)

    if stride == 1:
        Ho, Wo, Wl = H, W, W + 2
        # pad 1 top / 1 left / 1 right (the conv's padding) + 2 extra zero rows so the
        # flat shifted reads of the last (garbage) columns stay in bounds.
        xp = jnp.pad(x_nchw, ((0, 0), (0, 0), (1, 2), (1, 1)))
        x_flat = xp.reshape(B, Cin, (H + 3) * Wl)
        cin_eff = Cin
        offsets = tuple(ky * Wl + kx for ky in range(3) for kx in range(3))
    elif stride == 2:
        assert H % 2 == 0 and W % 2 == 0
        Ho, Wo = H // 2, W // 2
        Hs, Ws = (H + 2) // 2, (W + 2) // 2
        Wl = Ws
        xp = jnp.pad(x_nchw, ((0, 0), (0, 0), (1, 1), (1, 1)))
        # space-to-depth (factor 2): stride-2 3x3 conv == stride-1 2x2 conv on it.
        xs = xp.reshape(B, Cin, Hs, 2, Ws, 2).transpose(0, 3, 5, 1, 2, 4)
        xs = xs.reshape(B, 4 * Cin, Hs, Ws)
        xs = jnp.pad(xs, ((0, 0), (0, 0), (0, 1), (0, 0)))    # extra zero row
        x_flat = xs.reshape(B, 4 * Cin, (Hs + 1) * Ws)
        cin_eff = 4 * Cin
        offsets = (0, 1, Wl, Wl + 1)
    else:
        raise ValueError(f"unsupported stride {stride}")

    x_flat = x_flat.astype(jnp.bfloat16)                      # bf16 HBM feed
    Min = x_flat.shape[-1]
    T = len(offsets)
    K = T * cin_eff
    M = Ho * Wl

    out = pl.pallas_call(
        functools.partial(_conv_taps_kernel, offsets=offsets, cin=cin_eff, relu=relu),
        out_shape=jax.ShapeDtypeStruct((B, Cout, M), jnp.bfloat16),
        grid=(B,),
        in_specs=[
            pl.BlockSpec((None, cin_eff, Min), lambda bi: (bi, 0, 0)),   # image slab
            pl.BlockSpec((Cout, K), lambda bi: (0, 0)),                  # tap weights
            pl.BlockSpec((Cout, 1), lambda bi: (0, 0)),                  # bias
        ],
        out_specs=pl.BlockSpec((None, Cout, M), lambda bi: (bi, 0, 0)),
        scratch_shapes=[pltpu.VMEM((K, M), jnp.bfloat16)],
        compiler_params=pltpu.CompilerParams(
            dimension_semantics=("parallel",),
            vmem_limit_bytes=VMEM_LIMIT_BYTES),
    )(x_flat, w_cat, b_f)

    # Drop the padded-width garbage columns (small slice; fuses with the caller).
    return out.reshape(B, Cout, Ho, Wl)[:, :, :, :Wo]


def _build_qkv_weights(p):
    """Concatenate Wq/Wk/Wv (+biases); zero-pad q/k blocks to a multiple of 8 rows."""
    cq = p["q_w"].shape[0]
    cqp = max(8, ((cq + 7) // 8) * 8)
    pad = cqp - cq

    def padw(w):
        return jnp.pad(w, ((0, pad), (0, 0)))

    def padb(b):
        return jnp.pad(b, (0, pad))

    w_qkv = jnp.concatenate([padw(p["q_w"]), padw(p["k_w"]), p["v_w"]], axis=0)
    b_qkv = jnp.concatenate([padb(p["q_b"]), padb(p["k_b"]), p["v_b"]], axis=0)
    return (w_qkv.astype(jnp.bfloat16),
            b_qkv.reshape(-1, 1).astype(jnp.float32), cqp)


def fused_position_attention(x_ncl, pos_cl, w_qkv, b_qkv, gamma, *, cqp):
    """gamma * softmax(Q K^T) V + (X + pos), one fused Pallas kernel per batch element."""
    B, C, L = x_ncl.shape
    R = w_qkv.shape[0]
    return pl.pallas_call(
        functools.partial(_attention_kernel, cqp=cqp),
        out_shape=jax.ShapeDtypeStruct((B, C, L), jnp.bfloat16),
        grid=(B,),
        in_specs=[
            pl.BlockSpec(memory_space=pltpu.MemorySpace.SMEM),      # gamma (1,1)
            pl.BlockSpec((None, C, L), lambda bi: (bi, 0, 0)),      # x (bf16)
            pl.BlockSpec((C, L), lambda bi: (0, 0)),                # pos (shared, f32)
            pl.BlockSpec((R, C), lambda bi: (0, 0)),                # W_qkv
            pl.BlockSpec((R, 1), lambda bi: (0, 0)),                # b_qkv
        ],
        out_specs=pl.BlockSpec((None, C, L), lambda bi: (bi, 0, 0)),
        compiler_params=pltpu.CompilerParams(
            dimension_semantics=("parallel",),
            vmem_limit_bytes=VMEM_LIMIT_BYTES),
    )(gamma.reshape(1, 1).astype(jnp.float32), x_ncl, pos_cl, w_qkv, b_qkv)


def attention_layer_forward(x_nchw, p, pos_nchw):
    """AttentionLayer.forward (NCHW): pre_conv -> (+pos, attention) -> final_conv."""
    x = conv3x3_bn(x_nchw, p["pre_w"], p["pre_b"], p["pre_scale"], p["pre_shift"],
                   stride=p["stride"], relu=False)
    B, C, H, W = x.shape
    L = H * W
    if pos_nchw is None:
        pos_cl = jnp.zeros((C, L), jnp.float32)
    else:
        pos_cl = pos_nchw.reshape(-1, C, L)[0].astype(jnp.float32)
    w_qkv, b_qkv, cqp = _build_qkv_weights(p)
    out = fused_position_attention(x.reshape(B, C, L), pos_cl, w_qkv, b_qkv,
                                   p["gamma"], cqp=cqp)
    out = out.reshape(B, C, H, W)
    out = conv3x3_bn(out, p["fin_w"], p["fin_b"], p["fin_scale"], p["fin_shift"],
                     stride=1, relu=True)                     # F.relu(final_conv(.))
    return out


def trans_conv_encoder_forward(x_nchw, layer_params, pos_embeds):
    """TransConvEncoderModule.forward; input/output in NCHW (PyTorch convention)."""
    x = x_nchw
    for p, pos in zip(layer_params, pos_embeds):
        x = attention_layer_forward(x, p, pos)
    return x.astype(jnp.float32)


def build_position_encoding_nchw(hidden_dim, pos_shape):
    """PositionEmbeddingSine(hidden_dim//2) on an all-zero mask, returned NCHW."""
    bs, h, w = pos_shape
    num_pos_feats = hidden_dim // 2
    temperature = 10000.0
    ones = jnp.ones((bs, h, w), jnp.float32)
    y_embed = jnp.cumsum(ones, axis=1)
    x_embed = jnp.cumsum(ones, axis=2)
    dim_t = jnp.arange(num_pos_feats, dtype=jnp.float32)
    dim_t = temperature ** (2.0 * jnp.floor(dim_t / 2.0) / num_pos_feats)
    pos_x = x_embed[:, :, :, None] / dim_t
    pos_y = y_embed[:, :, :, None] / dim_t
    pos_x = jnp.stack((jnp.sin(pos_x[:, :, :, 0::2]), jnp.cos(pos_x[:, :, :, 1::2])),
                      axis=4).reshape(bs, h, w, -1)
    pos_y = jnp.stack((jnp.sin(pos_y[:, :, :, 0::2]), jnp.cos(pos_y[:, :, :, 1::2])),
                      axis=4).reshape(bs, h, w, -1)
    pos = jnp.concatenate((pos_y, pos_x), axis=3)             # (bs, h, w, hidden)
    return jnp.transpose(pos, (0, 3, 1, 2))                   # (bs, hidden, h, w)


def init_attention_layer_params(key, in_dim, out_dim, ratio, stride):
    ks = jax.random.split(key, 16)
    s = 0.08
    eps = 1e-5

    def nrm(k, shape, scale=s):
        return scale * jax.random.normal(k, shape, dtype=jnp.float32)

    cq = out_dim // ratio
    # BN folded with running_mean=0, running_var=1 (eval-mode stats).
    return {
        "stride": stride,
        "pre_w": nrm(ks[0], (out_dim, in_dim, 3, 3)),          # OIHW
        "pre_b": nrm(ks[1], (out_dim,)),
        "pre_scale": (1.0 + nrm(ks[2], (out_dim,))) / jnp.sqrt(1.0 + eps),
        "pre_shift": nrm(ks[3], (out_dim,)),
        "q_w": nrm(ks[4], (cq, out_dim)),                      # 1x1 conv (out, in)
        "q_b": nrm(ks[5], (cq,)),
        "k_w": nrm(ks[6], (cq, out_dim)),
        "k_b": nrm(ks[7], (cq,)),
        "v_w": nrm(ks[8], (out_dim, out_dim)),
        "v_b": nrm(ks[9], (out_dim,)),
        "fin_w": nrm(ks[10], (out_dim, out_dim, 3, 3)),
        "fin_b": nrm(ks[11], (out_dim,)),
        "fin_scale": (1.0 + nrm(ks[12], (out_dim,))) / jnp.sqrt(1.0 + eps),
        "fin_shift": nrm(ks[13], (out_dim,)),
        # nn.Parameter(torch.zeros(1)) in torch; drawn nonzero here so the attention
        # path actually contributes to the numerical check.
        "gamma": nrm(ks[14], (1,), scale=0.2),
    }


# ---------------------- pure-JAX reference (for checking) -------------------

def _ref_conv3x3_bn(x, w, b, scale, shift, stride):
    y = lax.conv_general_dilated(x, w, (stride, stride), ((1, 1), (1, 1)),
                                 dimension_numbers=("NCHW", "OIHW", "NCHW"))
    return ((y + b[None, :, None, None]) * scale[None, :, None, None]
            + shift[None, :, None, None])


def reference_forward(x_nchw, layer_params, pos_embeds):
    x = x_nchw.astype(jnp.float32)
    for p, pos in zip(layer_params, pos_embeds):
        x = _ref_conv3x3_bn(x, p["pre_w"], p["pre_b"], p["pre_scale"], p["pre_shift"],
                            p["stride"])
        if pos is not None:
            x = x + pos
        B, C, H, W = x.shape
        L = H * W
        xf = x.reshape(B, C, L)
        q = jax.nn.relu(jnp.einsum("qc,bcl->bql", p["q_w"], xf) + p["q_b"][None, :, None])
        k = jnp.einsum("qc,bcl->bql", p["k_w"], xf) + p["k_b"][None, :, None]
        v = jnp.einsum("vc,bcl->bvl", p["v_w"], xf) + p["v_b"][None, :, None]
        energy = jnp.einsum("bqi,bqj->bij", q, k)
        attn = jax.nn.softmax(energy, axis=-1)
        out = jnp.einsum("bij,bcj->bci", attn, v)
        out = p["gamma"].reshape(()) * out + xf
        out = out.reshape(B, C, H, W)
        out = _ref_conv3x3_bn(out, p["fin_w"], p["fin_b"], p["fin_scale"],
                              p["fin_shift"], 1)
        x = jax.nn.relu(out)
    return x


# --------------------------------- main --------------------------------------

if __name__ == "__main__":
    key = jax.random.PRNGKey(0)
    k_x, k_l1, k_l2 = jax.random.split(key, 3)

    # Module config (small shapes): two attention layers, the first downscales by 2.
    # Chosen so the post-downscale L = 8*16 = 128 = one full lane width.
    B, Cin, H, W = 2, 8, 16, 32
    attn_in_dims = (8, 16)
    attn_out_dims = (16, 32)
    strides = (2, 1)
    ratios = (4, 4)
    pos_shape = (1, 8, 16)   # (bs, h, w) of the feature map after the stride-2 pre_conv

    x = jax.random.normal(k_x, (B, Cin, H, W), dtype=jnp.float32)   # NCHW input

    layer_params = [
        init_attention_layer_params(k_l1, attn_in_dims[0], attn_out_dims[0],
                                    ratios[0], strides[0]),
        init_attention_layer_params(k_l2, attn_in_dims[1], attn_out_dims[1],
                                    ratios[1], strides[1]),
    ]
    pos_embeds = [build_position_encoding_nchw(d, pos_shape) for d in attn_out_dims]

    out = jax.block_until_ready(trans_conv_encoder_forward(x, layer_params, pos_embeds))
    assert out.shape == (B, attn_out_dims[-1], pos_shape[1], pos_shape[2]), out.shape

    ref = jax.block_until_ready(reference_forward(x, layer_params, pos_embeds))
    # bf16 MXU operands + bf16 inter-kernel activations vs. the pure-f32 reference.
    err = float(jnp.max(jnp.abs(out - ref)))
    assert jnp.allclose(out, ref, rtol=5e-2, atol=1e-1), err

    print("KERNEL_OK")
</pallas_src>

<mosaic_0001>
module attributes {stable_mosaic.version = 11 : i64} {
  func.func @_conv_taps_kernel(%arg0: i32, %arg1: memref<1x32x170xbf16, #tpu.memory_space<vmem>>, %arg2: memref<16x128xbf16, #tpu.memory_space<vmem>>, %arg3: memref<16x1xf32, #tpu.memory_space<vmem>>, %arg4: memref<1x16x136xbf16, #tpu.memory_space<vmem>>, %arg5: memref<128x136xbf16, #tpu.memory_space<vmem>>) attributes {dimension_semantics = [#tpu.dimension_semantics<parallel>], iteration_bounds = array<i64: 2>, scalar_prefetch = 0 : i64, scratch_operands = 1 : i64, tpu.core_type = #tpu.core_type<tc>, window_params = [{transform_indices = @transform_0, window_bounds = array<i64: 1, 32, 170>}, {pipeline_mode = #tpu.pipeline_mode<synchronous>, transform_indices = @transform_1, window_bounds = array<i64: 16, 128>}, {pipeline_mode = #tpu.pipeline_mode<synchronous>, transform_indices = @transform_2, window_bounds = array<i64: 16, 1>}, {transform_indices = @transform_3, window_bounds = array<i64: 1, 16, 136>}]} {
    %c0 = arith.constant 0 : index
    %c0_0 = arith.constant 0 : index
    %c0_1 = arith.constant 0 : index
    %0 = vector.load %arg1[%c0, %c0_0, %c0_1] : memref<1x32x170xbf16, #tpu.memory_space<vmem>>, vector<1x32x136xbf16>
    %1 = vector.shape_cast %0 : vector<1x32x136xbf16> to vector<32x136xbf16>
    %c0_2 = arith.constant 0 : index
    %c0_3 = arith.constant 0 : index
    %2 = vector.load %arg5[%c0_2, %c0_3] : memref<128x136xbf16, #tpu.memory_space<vmem>>, vector<32x136xbf16>
    tpu.vector_store %arg5[%c0_2, %c0_3], %1 {strides = array<i32>} : memref<128x136xbf16, #tpu.memory_space<vmem>>, vector<32x136xbf16>,
    %c0_4 = arith.constant 0 : index
    %c0_5 = arith.constant 0 : index
    %c1 = arith.constant 1 : index
    %3 = vector.load %arg1[%c0_4, %c0_5, %c1] : memref<1x32x170xbf16, #tpu.memory_space<vmem>>, vector<1x32x136xbf16>
    %4 = vector.shape_cast %3 : vector<1x32x136xbf16> to vector<32x136xbf16>
    %c32 = arith.constant 32 : index
    %c0_6 = arith.constant 0 : index
    %5 = vector.load %arg5[%c32, %c0_6] : memref<128x136xbf16, #tpu.memory_space<vmem>>, vector<32x136xbf16>
    tpu.vector_store %arg5[%c32, %c0_6], %4 {strides = array<i32>} : memref<128x136xbf16, #tpu.memory_space<vmem>>, vector<32x136xbf16>,
    %c0_7 = arith.constant 0 : index
    %c0_8 = arith.constant 0 : index
    %c17 = arith.constant 17 : index
    %6 = vector.load %arg1[%c0_7, %c0_8, %c17] : memref<1x32x170xbf16, #tpu.memory_space<vmem>>, vector<1x32x136xbf16>
    %7 = vector.shape_cast %6 : vector<1x32x136xbf16> to vector<32x136xbf16>
    %c64 = arith.constant 64 : index
    %c0_9 = arith.constant 0 : index
    %8 = vector.load %arg5[%c64, %c0_9] : memref<128x136xbf16, #tpu.memory_space<vmem>>, vector<32x136xbf16>
    tpu.vector_store %arg5[%c64, %c0_9], %7 {strides = array<i32>} : memref<128x136xbf16, #tpu.memory_space<vmem>>, vector<32x136xbf16>,
    %c0_10 = arith.constant 0 : index
    %c0_11 = arith.constant 0 : index
    %c18 = arith.constant 18 : index
    %9 = vector.load %arg1[%c0_10, %c0_11, %c18] : memref<1x32x170xbf16, #tpu.memory_space<vmem>>, vector<1x32x136xbf16>
    %10 = vector.shape_cast %9 : vector<1x32x136xbf16> to vector<32x136xbf16>
    %c96 = arith.constant 96 : index
    %c0_12 = arith.constant 0 : index
    %11 = vector.load %arg5[%c96, %c0_12] : memref<128x136xbf16, #tpu.memory_space<vmem>>, vector<32x136xbf16>
    tpu.vector_store %arg5[%c96, %c0_12], %10 {strides = array<i32>} : memref<128x136xbf16, #tpu.memory_space<vmem>>, vector<32x136xbf16>,
    %c0_13 = arith.constant 0 : index
    %c0_14 = arith.constant 0 : index
    %12 = vector.load %arg2[%c0_13, %c0_14] : memref<16x128xbf16, #tpu.memory_space<vmem>>, vector<16x128xbf16>
    %c0_15 = arith.constant 0 : index
    %c0_16 = arith.constant 0 : index
    %13 = vector.load %arg5[%c0_15, %c0_16] : memref<128x136xbf16, #tpu.memory_space<vmem>>, vector<128x136xbf16>
    %cst = arith.constant dense<0.000000e+00> : vector<16x136xf32>
    %14 = tpu.matmul %12, %13, %cst {dimension_numbers = #tpu.dot_dimension_numbers<[1], [0], [0], [1], [0, 0, 1, 1], [], []>} : vector<16x128xbf16>, vector<128x136xbf16>, vector<16x136xf32> -> vector<16x136xf32>
    %c0_17 = arith.constant 0 : index
    %c0_18 = arith.constant 0 : index
    %15 = vector.load %arg3[%c0_17, %c0_18] : memref<16x1xf32, #tpu.memory_space<vmem>>, vector<16x1xf32>
    %16 = vector.broadcast %15 : vector<16x1xf32> to vector<16x136xf32>
    %17 = arith.addf %14, %16 : vector<16x136xf32>
    %18 = arith.truncf %17 : vector<16x136xf32> to vector<16x136xbf16>
    %c0_19 = arith.constant 0 : index
    %c0_20 = arith.constant 0 : index
    %c0_21 = arith.constant 0 : index
    %19 = vector.load %arg4[%c0_19, %c0_20, %c0_21] : memref<1x16x136xbf16, #tpu.memory_space<vmem>>, vector<1x16x136xbf16>
    %20 = vector.shape_cast %19 : vector<1x16x136xbf16> to vector<16x136xbf16>
    %21 = vector.shape_cast %18 : vector<16x136xbf16> to vector<1x16x136xbf16>
    tpu.vector_store %arg4[%c0_19, %c0_20, %c0_21], %21 {strides = array<i32>} : memref<1x16x136xbf16, #tpu.memory_space<vmem>>, vector<1x16x136xbf16>,
    return
  }
  func.func @transform_0(%arg0: i32) -> (i32, i32, i32) {
    %c0_i32 = arith.constant 0 : i32
    %c0_i32_0 = arith.constant 0 : i32
    %c0_i32_1 = arith.constant 0 : i32
    return %arg0, %c0_i32, %c0_i32_0 : i32, i32, i32
  }
  func.func @transform_1(%arg0: i32) -> (i32, i32) {
    %c0_i32 = arith.constant 0 : i32
    %c0_i32_0 = arith.constant 0 : i32
    %c0_i32_1 = arith.constant 0 : i32
    return %c0_i32, %c0_i32_0 : i32, i32
  }
  func.func @transform_2(%arg0: i32) -> (i32, i32) {
    %c0_i32 = arith.constant 0 : i32
    %c0_i32_0 = arith.constant 0 : i32
    %c0_i32_1 = arith.constant 0 : i32
    return %c0_i32, %c0_i32_0 : i32, i32
  }
  func.func @transform_3(%arg0: i32) -> (i32, i32, i32) {
    %c0_i32 = arith.constant 0 : i32
    %c0_i32_0 = arith.constant 0 : i32
    %c0_i32_1 = arith.constant 0 : i32
    return %arg0, %c0_i32, %c0_i32_0 : i32, i32, i32
  }
}

</mosaic_0001>

<bundles_post_ra>
// kernel: tpu_custom_call.1
= control target key start
LH: loop header
LB: loop body
LE: loop exit
PB: predicated region body
PF: predicated region fallthrough
CT: control target
= control target key end

     0   :  { %8 = vsyncpa [#allocation4], 0  ;;  %s1008_s0 = inlined_call_operand.hbm [shape: bf16[2,32,170], index: 0, kind: input, shape index: {}]   ;;  %s1009_s1 = inlined_call_operand.vmem [shape: bf16[16,128], index: 1, kind: input, shape index: {}]   ;;  %s1010_s2 = inlined_call_operand.vmem [shape: f32[16,1], index: 2, kind: input, shape index: {}]   ;;  %s1011_s3 = inlined_call_operand.hbm [shape: bf16[2,16,136], index: 3, kind: output, shape index: {}]  }
   0x1   :  { %10 = vsyncpa [#allocation4 + $0x1], 0 }
   0x2   :  { %11 = vsyncpa [#allocation5], 0 }
   0x3   :  { %13 = vsyncpa [#allocation5 + $0x1], 0  ;;  %s800_s12 = smov 0   ;;  %s802_s13 = smov 0  }
   0x4   :  { %s804_s14 = smov 0   ;;  %s806_s15 = smov 0  }
   0x5 LB: > { %s821_s16 = sadd.s32 4294967295, %s768_s15   ;;  %s560_s17 = sadd.s32 4294967294, %s768_s15   ;;  %s768_s15 = sphi %s806_s15, %s1028_s15   ;;  %s764_s14 = sphi %s804_s14, %s1027_s14   ;;  %s760_s13 = sphi %s802_s13, %s1026_s13   ;;  %s756_s12 = sphi %s800_s12, %s1025_s12  }
   0x6   : > { %s825_s18 = sadd.s32 1, %s768_s15   ;;  %s26_s19 = sadd.s32 1, %s764_s14 }
   0x7   : > { %s23_s20 = ssub.s32 %s768_s15, %s825_s18  ;;  %p33_p0 = scmp.ne.s32.totalorder %s764_s14, %s760_s13 }
   0x8   : > { %p24_p1 = scmp.eq.s32.totalorder %s23_s20, 0  ;;  %p34_p2 = scmp.eq.s32.totalorder %s768_s15, 0 }
   0x9   : > { %p39_p3 = scmp.ne.s32.totalorder %s760_s13, %s756_s12  ;;  %p40_p4 = scmp.eq.s32.totalorder %s821_s16, 0 }
   0xa   : > { %s837_s21 = scalar_select %p24_p1, %s764_s14, %s26_s19  }
   0xb   : > { %p839_p5 = por %p34_p2, %p33_p0  ;;  %p843_p6 = por %p40_p4, %p39_p3 }
   0xc   : > { %p105_p7 = scmp.eq.s32.totalorder %s821_s16, 1  ;;  %p111_p8 = scmp.eq.s32.totalorder %s560_s17, 1 }
   0xd   : > { %s1015_s23 = scalar_select %p843_p6, 1, 0 }
   0xe   : > { %p609_p10 = scmp.lt.s32.totalorder %s768_s15, 2  ;;  %p850_p11 = por %p105_p7, %p33_p0 }
   0xf   : > { %p854_p12 = por %p111_p8, %p39_p3  ;;  %s137_s26 = sand.u32 1, %s764_s14  }
  0x10   : > { %s1016_s24 = scalar_select %p850_p11, 1, 0 }
  0x11   : > { %s1017_s25 = scalar_select %p854_p12, 1, 0 }
  0x12   : > { %s593_s27 = sshll.u32 %s768_s15, 9  ;;  %s563_s28 = sshll.u32 %s137_s26, 5 }
  0x13   : > { %s863_s4 = scalar_lea.hbm %s1008_s0, %s593_s27  ;;  %s141_s5 = scalar_lea.vmem [#allocation3], %s563_s28 }
  0x14   : > { %s148_s6 = sshll.u32 %s141_s5, 4  ;;  %p867_p13 = pnand %p609_p10, %p839_p5  ;;  %s871_s6 = int_to_ptr.vmem [resolvable:$true] %s148_s6 }
  0x15   : > { %s873_s8 = scalar_lea.sflag [#allocation4], %s137_s26  ;;  %s676_s9 = scalar_lea.hbm %s863_s4, 512 }
  0x16   : > { %p677_p0 = scmp.ne.s32.totalorder %s863_s4, %s676_s9  ;;  %p678_p1 = pneg %p867_p13 }
  0x17   : > { %s681_s17 = scalar_lea.hbm %s1008_s0, 1024  ;;  %p682_p4 = scmp.lt.s32.totalorder %s863_s4, %s1008_s0 }
  0x18   : > { %p679_p2 = pnand %p678_p1, %p677_p0  ;;  %p683_p5 = scmp.lt.s32.totalorder %s681_s17, %s676_s9 }
  0x1a   : > { %p680_p3 = pneg %p679_p2  ;;  %p684_p7 = por %p683_p5, %p682_p4 }
  0x1c   : > { %p685_p8 = pnand %p684_p7, %p680_p3 }
  0x1e   : > { %688 = shalt.err (!%p685_p8)
}
  0x1f   : > { %s689_s22 = scalar_lea.vmem %s871_s6, 512  ;;  %s770_s26 = smov [#allocation3]  }
  0x20   : > { %p690_p10 = scmp.ne.s32.totalorder %s871_s6, %s689_s22  ;;  %s694_s27 = sshll.u32 %s770_s26, 4  ;;  %s695_s27 = int_to_ptr.vmem [resolvable:$false] %s694_s27 }
  0x21   : > { %s696_s28 = scalar_lea.vmem %s695_s27, 1024  ;;  %p697_p2 = scmp.lt.s32.totalorder %s871_s6, %s695_s27 }
  0x22   : > { %p692_p9 = pnand %p690_p10, %p678_p1  ;;  %p698_p12 = scmp.lt.s32.totalorder %s696_s28, %s689_s22 }
  0x24   : > { %p693_p0 = pneg %p692_p9  ;;  %p699_p11 = por %p698_p12, %p697_p2 }
  0x26   : > { %p700_p6 = pnand %p699_p11, %p693_p0 }
  0x28   : > { %703 = shalt.err (!%p700_p6)
}
  0x29   : > { %s771_s29 = smov 128   ;;  %s772_s30 = smov 8  }
  0x2a   : > { %604 = dma.hbm_to_vmem [thread:$0]  (!%p867_p13), %s863_s4, 512, %s871_s6, %s873_s8, %s771_s29, %s771_s29, %s772_s30  }
  0x2b   : > { %p566_p9 = scmp.ge.s32.totalorder %s768_s15, 1  ;;  %p156_p1 = scmp.lt.s32.totalorder %s768_s15, 3 }
  0x2d   : > { %p157_p3 = pnand %p566_p9, %p156_p1 }
  0x2e   : > { %s897_s5 = sand.u32 (!%p157_p3), 1, %s760_s13   ;;  %p1019_p6 = scmp.ne.s32.totalorder (!%p157_p3), %s1015_s23, 0 }
  0x2f   : > { %160 = sbr.rel (%p157_p3) target bundleno = 434 (0x1b2), region = 32  ;;  %s567_s9 = sshll.u32 (!%p157_p3), %s897_s5, 5 }
  0x30   : > { %s163_s10 = scalar_lea.sflag (!%p157_p3), [#allocation4], %s897_s5  ;;  %s166_s11 = scalar_lea.vmem (!%p157_p3), [#allocation3], %s567_s9 }
  0x34   : > { %747 = dma.done.wait (%p1019_p6), %s163_s10, 512  }
  0x35   : > { %749 = vsyncadd (%p1019_p6), %s163_s10, 4294966784  ;;  %vm194_vm0 = vcmask 1043456   ;;  %vm195_vm1 = vcmask 64516   ;;  %v269_v1 = vld [vmem:[%s166_s11 + $0x10] sm:$0xff]  ;;  %v267_v2 = vld [vmem:[%s166_s11] sm:$0xff]  ;;  %s773_s4 = smov 110  }
  0x36   : > { %vm905_vm2 = vmor %vm195_vm1, %vm194_vm0  ;;  %v270_v3 = vld [vmem:[%s166_s11 + $0x18] sm:$0xff]  ;;  %279 = vrot.lane.b32.xlu0 %v269_v1, %s773_s4  ;;  %275 = vrot.lane.b32.xlu1 %v267_v2, %s773_s4  ;;  %v268_v4 = vld [vmem:[%s166_s11 + $0x8] sm:$0xff]  ;;  %s774_s23 = smov 111   ;;  %s775_s6 = smov 127   ;;  %v776_v5 = vmov 0   ;;  %vm287_vm3 = vcmask 900096  }
  0x37   : > { %199 = vst.msk [vmem:[#allocation2 + $0x10] sm:$0xff] %vm905_vm2, %v269_v1  ;;  %200 = vst.msk [vmem:[#allocation2 + $0x18] sm:$0xff] %vm905_vm2, %v270_v3  ;;  %448 = vmatprep.mubr.bf16.mxu0 %v776_v5  ;;  %651 = vset.pattern.permute.xlu0 %v776_v5  ;;  %v318_v6 = vld [vmem:[%s1010_s2] sm:$0xff]  ;;  %v319_v7 = vld [vmem:[%s1010_s2 + $0x8] sm:$0xff]  ;;  %vm254_vm4 = vcmask 908288   ;;  %vm221_vm5 = vcmask 1039360  }
  0x38   : > { %197 = vst.msk [vmem:[#allocation2] sm:$0xff] %vm905_vm2, %v267_v2  ;;  %198 = vst.msk [vmem:[#allocation2 + $0x8] sm:$0xff] %vm905_vm2, %v268_v4  ;;  %652 = vset.pattern.permute.xlu1 %v776_v5  ;;  %s568_s26 = sshll.u32 %s897_s5, 4  ;;  %s596_s27 = sshll.u32 %s821_s16, 8 }
  0x39   : > { %s188_s28 = scalar_lea.vmem [#allocation6], %s568_s26  ;;  %s961_s10 = scalar_lea.hbm %s1011_s3, %s596_s27 }
  0x3a   : > { %281 = vrot.lane.b32.xlu0 %v270_v3, %s773_s4  ;;  %277 = vrot.lane.b32.xlu1 %v268_v4, %s773_s4  ;;  %s487_s29 = sshll.u32 %s188_s28, 4  ;;  %s474_s16 = scalar_lea.sflag [#allocation5], %s897_s5  ;;  %s963_s29 = int_to_ptr.vmem [resolvable:$true] %s487_s29 }
  0x3b   : > { %s704_s11 = scalar_lea.vmem %s963_s29, 256  ;;  %p1022_p12 = scmp.ne.s32.totalorder %s1016_s24, 0 }
  0x3c   : > { %p705_p11 = scmp.ne.s32.totalorder %s963_s29, %s704_s11  ;;  %s777_s4 = smov [#allocation6]  }
  0x3e   : > { %248 = vrot.lane.b32.xlu1 %v270_v3, %s774_s23  ;;  %246 = vrot.lane.b32.xlu0 %v269_v1, %s774_s23  ;;  %v669_v59 = vld [vmem:[#allocation2 + $0x14] ss:$8 sps:$4 sm:$0xff]   ;;  %v671_v61 = vld [vmem:[#allocation2 + $0x10] ss:$8 sps:$4 sm:$0xff]   ;;  %p706_p13 = pnand %p705_p11, %p1022_p12 }
  0x3f   : > { %v672_v62 = vld [vmem:[#allocation2 + $0x4] ss:$8 sps:$4 sm:$0xff]   ;;  %v674_v63 = vld [vmem:[#allocation2] ss:$8 sps:$4 sm:$0xff]  }
  0x40   : > { %p707_p4 = pneg %p706_p13 }
  0x42   : > { %244 = vrot.lane.b32.xlu1 %v268_v4, %s774_s23  ;;  %242 = vrot.lane.b32.xlu0 %v267_v2, %s774_s23  ;;  %s708_s23 = sshll.u32 %s777_s4, 4  ;;  %s709_s23 = int_to_ptr.vmem [resolvable:$false] %s708_s23 }
  0x43   : > { %p711_p5 = scmp.lt.s32.totalorder %s963_s29, %s709_s23 }
  0x46   : > { %215 = vrot.lane.b32.xlu1 %v270_v3, %s775_s6  ;;  %213 = vrot.lane.b32.xlu0 %v269_v1, %s775_s6  ;;  %v675_v1 = vld [vmem:[%s1009_s1] sm:$0xff]  }
  0x4a   : > { %211 = vrot.lane.b32.xlu1 %v268_v4, %s775_s6  ;;  %209 = vrot.lane.b32.xlu0 %v267_v2, %s775_s6  ;;  %s710_s6 = scalar_lea.vmem %s709_s23, 512 }
  0x4b   : > { %p712_p7 = scmp.lt.s32.totalorder %s710_s6, %s704_s11 }
  0x4d   : > { %p713_p8 = por %p712_p7, %p711_p5 }
  0x4e   : > { %322 = vperm.xlu0 %651, %v318_v6   ;;  %327 = vperm.xlu1 %652, %v319_v7  }
  0x4f   : > { %p714_p10 = pnand %p713_p8, %p707_p4 }
  0xa8   : > { %v280_v8 = vpop.permute.xlu0 %279  ;;  %v276_v9 = vpop.permute.xlu1 %275 }
  0xa9   : > { %v285_v10 = vrot.slane %v280_v8, 4  ;;  %v283_v11 = vrot.slane %v276_v9, 4 }
  0xab   : > { %v290_v12 = vsel %vm287_vm3, %v280_v8, %v285_v10  ;;  %v288_v13 = vsel %vm287_vm3, %v276_v9, %v283_v11 }
  0xac   : > { %298 = vst.msk [vmem:[#allocation2 + $0x70] sm:$0xff] %vm905_vm2, %v290_v12  ;;  %296 = vst.msk [vmem:[#allocation2 + $0x60] sm:$0xff] %vm905_vm2, %v288_v13  ;;  %v282_v14 = vpop.permute.xlu0 %281  ;;  %v278_v15 = vpop.permute.xlu1 %277 }
  0xad   : > { %v286_v16 = vrot.slane %v282_v14, 4  ;;  %v284_v17 = vrot.slane %v278_v15, 4 }
  0xaf   : > { %v291_v18 = vsel %vm287_vm3, %v282_v14, %v286_v16  ;;  %v289_v19 = vsel %vm287_vm3, %v278_v15, %v284_v17 }
  0xb0   : > { %299 = vst.msk [vmem:[#allocation2 + $0x78] sm:$0xff] %vm905_vm2, %v291_v18  ;;  %297 = vst.msk [vmem:[#allocation2 + $0x68] sm:$0xff] %vm905_vm2, %v289_v19  ;;  %v249_v20 = vpop.permute.xlu1 %248  ;;  %v247_v21 = vpop.permute.xlu0 %246 }
  0xb1   : > { %v253_v22 = vrot.slane %v249_v20, 4  ;;  %v252_v23 = vrot.slane %v247_v21, 4 }
  0xb3   : > { %v258_v24 = vsel %vm254_vm4, %v249_v20, %v253_v22  ;;  %v257_v25 = vsel %vm254_vm4, %v247_v21, %v252_v23  ;;  %v316_v32 = vld [vmem:[#allocation2 + $0x70] sm:$0xff]  ;;  %v314_v42 = vld [vmem:[#allocation2 + $0x60] sm:$0xff] }
  0xb4   : > { %266 = vst.msk [vmem:[#allocation2 + $0x58] sm:$0xff] %vm905_vm2, %v258_v24  ;;  %265 = vst.msk [vmem:[#allocation2 + $0x50] sm:$0xff] %vm905_vm2, %v257_v25  ;;  %v245_v26 = vpop.permute.xlu1 %244  ;;  %v243_v27 = vpop.permute.xlu0 %242 }
  0xb5   : > { %v251_v28 = vrot.slane %v245_v26, 4  ;;  %v250_v29 = vrot.slane %v243_v27, 4 }
  0xb7   : > { %v256_v30 = vsel %vm254_vm4, %v245_v26, %v251_v28  ;;  %v255_v31 = vsel %vm254_vm4, %v243_v27, %v250_v29  ;;  %v317_v33 = vld [vmem:[#allocation2 + $0x78] sm:$0xff]  ;;  %v315_v40 = vld [vmem:[#allocation2 + $0x68] sm:$0xff] }
  0xb8   : > { %v653_v34 = vld [vmem:[#allocation2 + $0x74] ss:$8 sps:$4 sm:$0xff]   ;;  %264 = vst.msk [vmem:[#allocation2 + $0x48] sm:$0xff] %vm905_vm2, %v256_v30  ;;  %263 = vst.msk [vmem:[#allocation2 + $0x40] sm:$0xff] %vm905_vm2, %v255_v31  ;;  %v216_v35 = vpop.permute.xlu1 %215  ;;  %v214_v36 = vpop.permute.xlu0 %213  ;;  %v584_v37 = vcombine.low %v316_v32, %v317_v33  ;;  %v655_v41 = vld [vmem:[#allocation2 + $0x64] ss:$8 sps:$4 sm:$0xff]   ;;  %v582_v48 = vcombine.low %v314_v42, %v315_v40 }
  0xb9   : > { %416 = vmatprep.subr.bf16.mxu0 %v653_v34  ;;  %v220_v38 = vrot.slane %v216_v35, 4  ;;  %v219_v39 = vrot.slane %v214_v36, 4 }
  0xba   : > { %417 = vmatpush1.bf16.msra.mxu0 %v584_v37 }
  0xbb   : > { %v225_v43 = vsel %vm221_vm5, %v216_v35, %v220_v38  ;;  %v224_v44 = vsel %vm221_vm5, %v214_v36, %v219_v39  ;;  %418 = vmatprep.subr.bf16.mxu0 %v655_v41  ;;  %v657_v45 = vld [vmem:[#allocation2 + $0x54] ss:$8 sps:$4 sm:$0xff]   ;;  %v659_v54 = vld [vmem:[#allocation2 + $0x50] ss:$8 sps:$4 sm:$0xff]  }
  0xbc   : > { %233 = vst.msk [vmem:[#allocation2 + $0x38] sm:$0xff] %vm905_vm2, %v225_v43  ;;  %232 = vst.msk [vmem:[#allocation2 + $0x30] sm:$0xff] %vm905_vm2, %v224_v44  ;;  %v212_v46 = vpop.permute.xlu1 %211  ;;  %v210_v47 = vpop.permute.xlu0 %209 }
  0xbd   : > { %v218_v49 = vrot.slane %v212_v46, 4  ;;  %v217_v50 = vrot.slane %v210_v47, 4 }
  0xbe   : > { %419 = vmatpush1.bf16.msra.mxu0 %v582_v48 }
  0xbf   : > { %v223_v51 = vsel %vm221_vm5, %v212_v46, %v218_v49  ;;  %v222_v52 = vsel %vm221_vm5, %v210_v47, %v217_v50  ;;  %420 = vmatprep.subr.bf16.mxu0 %v657_v45  ;;  %v660_v53 = vld [vmem:[#allocation2 + $0x44] ss:$8 sps:$4 sm:$0xff]   ;;  %v662_v56 = vld [vmem:[#allocation2 + $0x40] ss:$8 sps:$4 sm:$0xff]  }
  0xc0   : > { %231 = vst.msk [vmem:[#allocation2 + $0x28] sm:$0xff] %vm905_vm2, %v223_v51  ;;  %230 = vst.msk [vmem:[#allocation2 + $0x20] sm:$0xff] %vm905_vm2, %v222_v52 }
  0xc2   : > { %421 = vmatpush1.bf16.msra.mxu0 %v659_v54 }
  0xc3   : > { %422 = vmatprep.subr.bf16.mxu0 %v660_v53  ;;  %v663_v55 = vld [vmem:[#allocation2 + $0x34] ss:$8 sps:$4 sm:$0xff]   ;;  %v665_v58 = vld [vmem:[#allocation2 + $0x30] ss:$8 sps:$4 sm:$0xff]  }
  0xc6   : > { %423 = vmatpush1.bf16.msra.mxu0 %v662_v56 }
  0xc7   : > { %424 = vmatprep.subr.bf16.mxu0 %v663_v55  ;;  %v666_v57 = vld [vmem:[#allocation2 + $0x24] ss:$8 sps:$4 sm:$0xff]   ;;  %v668_v60 = vld [vmem:[#allocation2 + $0x20] ss:$8 sps:$4 sm:$0xff]  }
  0xc9   : > { %v323_v2 = vpop.permute.xlu0 %322  ;;  %v328_v7 = vpop.permute.xlu1 %327 }
  0xca   : > { %425 = vmatpush1.bf16.msra.mxu0 %v665_v58 }
  0xcb   : > { %426 = vmatprep.subr.bf16.mxu0 %v666_v57 }
  0xce   : > { %427 = vmatpush1.bf16.msra.mxu0 %v668_v60 }
  0xcf   : > { %428 = vmatprep.subr.bf16.mxu0 %v669_v59 }
  0xd2   : > { %429 = vmatpush1.bf16.msra.mxu0 %v671_v61 }
  0xd3   : > { %430 = vmatprep.subr.bf16.mxu0 %v672_v62 }
  0xd6   : > { %431 = vmatpush1.bf16.msra.mxu0 %v674_v63 }
  0xd9   : > { %449 = vmatmul.mubr.bf16.vlgmr.msra.gmra.mxu0 %v675_v1 }
 0x199   : > { %v450_v3 = vpop.f32.mrf.mxu0 }
 0x19a   : > { %v451_v5 = vadd.f32 %v450_v3, %v323_v2 }
 0x19b   : > { %v452_v4 = vpop.f32.mrf.mxu0 }
 0x19c   : > { %v453_v6 = vadd.f32 %v452_v4, %v323_v2 }
 0x19d   : > { %v454_v8 = vpop.f32.mrf.mxu0 }
 0x19e   : > { %v594_v9 = vpack.c.bf16 %v453_v6, %v451_v5  ;;  %v455_v11 = vadd.f32 %v454_v8, %v328_v7 }
 0x19f   : > { %v456_v10 = vpop.f32.mrf.mxu0 }
 0x1a0   : > { %471 = vst.msk [vmem:[%s188_s28] sm:$0xff] %vm905_vm2, %v594_v9  ;;  %v457_v12 = vadd.f32 %v456_v10, %v328_v7 }
 0x1a2   : > { %v595_v13 = vpack.c.bf16 %v457_v12, %v455_v11 }
 0x1a4   : > { %472 = vst.msk [vmem:[%s188_s28 + $0x8] sm:$0xff] %vm905_vm2, %v595_v13 }
 0x1a5   : > { %717 = shalt.err (!%p714_p10)
}
 0x1a6   : > { %s718_s7 = scalar_lea.hbm %s961_s10, 256  ;;  %s722_s19 = scalar_lea.hbm %s1011_s3, 512 }
 0x1a7   : > { %p719_p0 = scmp.ne.s32.totalorder %s961_s10, %s718_s7  ;;  %p723_p1 = scmp.lt.s32.totalorder %s961_s10, %s1011_s3 }
 0x1a8   : > { %p724_p3 = scmp.lt.s32.totalorder %s722_s19, %s718_s7 }
 0x1a9   : > { %p720_p2 = pnand %p719_p0, %p1022_p12 }
 0x1aa   : > { %p725_p6 = por %p724_p3, %p723_p1 }
 0x1ab   : > { %p721_p9 = pneg %p720_p2 }
 0x1ad   : > { %p726_p11 = pnand %p725_p6, %p721_p9 }
 0x1af   : > { %729 = shalt.err (!%p726_p11)
}
 0x1b0   : > { %s778_s26 = smov 128   ;;  %s779_s27 = smov 8  }
 0x1b1   : > { %599 = dma.vmem_to_hbm [thread:$0]  (%p1022_p12), %s963_s29, 256, %s961_s10, %s474_s16, %s778_s26, %s778_s26, %s779_s27  }
 0x1b2 PF: > { %s502_s28 = sand.u32 1, %s756_s12   ;;  %p1023_p13 = scmp.ne.s32.totalorder %s1017_s25, 0 }
 0x1b3   : > { %p1024_p4 = scmp.ge.s32.totalorder %s768_s15, 2  ;;  %s503_s30 = scalar_lea.sflag [#allocation5], %s502_s28 }
 0x1b5   : > { %p606_p5 = pnand %p1024_p4, %p1023_p13 }
 0x1b7   : > { %p607_p7 = pneg %p606_p5 }
 0x1b9   : > { %751 = dma.done.wait (%p607_p7), %s503_s30, 256  }
 0x1ba   : > { %753 = vsyncadd (%p607_p7), %s503_s30, 4294967040  ;;  %p16_p8 = scmp.ge.s32.totalorder %s825_s18, 4   ;;  %s1025_s12 = smov %s760_s13 }
 0x1bb   : > { %s1026_s13 = smov %s764_s14  ;;  %s1027_s14 = smov %s837_s21 }
 0x1bc   : > { %s1028_s15 = smov %s825_s18  ;;  %18 = sbr.rel (!%p16_p8) target bundleno = 5 (0x5), region = 77 }
 0x1c1   :  { %508 = vsyncpa [#allocation4], 1 }
 0x1c2   :  { %510 = vsyncpa [#allocation4 + $0x1], 1 }
 0x1c3   :  { %511 = vsyncpa [#allocation5], 1 }
 0x1c4   :  { %513 = vsyncpa [#allocation5 + $0x1], 1 }

</bundles_post_ra>
